<compile_context>
chip_gen: v7x
topology: tpu7x:2x2x1
jax: 0.10.0
libtpu: 0.0.40
codegen_flags: <defaults>
</compile_context>

<pallas_src>
import functools

import jax
import jax.numpy as jnp
from jax import lax
from jax.experimental import pallas as pl
from jax.experimental.pallas import tpu as pltpu


def _round_up(n, m):
    return ((n + m - 1) // m) * m


def _pick_m_tile(m, batch):
    """Rows of the fused (H_out*W_out) M dim per grid step.

    Multiple of 16 (bf16 sublane packing), capped at 512 (accumulator stays in
    vregs, no spill), and split further if needed so batch * n_tiles >= 2
    (feeds both TensorCores on v7x via the ("parallel","parallel") grid).
    """
    tm = min(_round_up(m, 16), 512)
    n_mt = -(-m // tm)
    if batch * n_mt < 2 and m > 16:
        tm = min(tm, _round_up(-(-m // 2), 16))
    return max(tm, 16)


# ----------------------------------------------------------------------------
# Pallas kernel: one big-K MXU matmul + folded-BN bias epilogue
# ----------------------------------------------------------------------------
def _conv_bn_kernel(p_ref, w_ref, b_ref, o_ref):
    # p_ref: (1, TM, K)      lane-dense merged-K patch rows (bf16 / f32)
    # w_ref: (K, N_pad)      BN-folded, zero-padded conv weight
    # b_ref: (1, N_pad)      folded conv bias + BN shift (f32)
    # o_ref: (1, TM, N_pad)  output tile (compute dtype)
    acc = jnp.dot(p_ref[0], w_ref[...], preferred_element_type=jnp.float32)
    o_ref[0] = (acc + b_ref[...]).astype(o_ref.dtype)


# ----------------------------------------------------------------------------
# Wrapper: BN folding, lane-dense merged-K patch construction, pallas_call
# ----------------------------------------------------------------------------
@functools.partial(jax.jit, static_argnames=("stride", "pad", "eps", "compute_dtype"))
def swiftformer_embeddings_forward(x, params, *, stride=2, pad=1, eps=1e-5,
                                   compute_dtype=jnp.bfloat16):
    """x: (B, C_in, H, W) NCHW -> (B, C_out, H_out, W_out) NCHW."""
    w = params["conv_weight"]          # (C_out, C_in, KH, KW)
    b = params["conv_bias"]            # (C_out,)
    gamma = params["bn_weight"]        # (C_out,)
    beta = params["bn_bias"]           # (C_out,)
    mean = params["bn_running_mean"]   # (C_out,)
    var = params["bn_running_var"]     # (C_out,)

    C_out, C_in, KH, KW = w.shape
    B, _, H, W = x.shape
    s = int(stride)

    H_out = (H + 2 * pad - KH) // s + 1
    W_out = (W + 2 * pad - KW) // s + 1
    n_off = -(-KW // s)                 # column-offset groups per kernel row
    W_cp = W_out + n_off - 1            # grouped width incl. right halo
    Wp = s * W_cp                       # padded input width (grouped)
    K_tot = KH * n_off * s * C_in       # merged contraction dim
    N_pad = _round_up(max(C_out, 1), 128)

    M = H_out * W_out
    TM = _pick_m_tile(M, B)
    n_mt = -(-M // TM)
    M_pad = n_mt * TM

    # ---- Fold BatchNorm (inference) + conv bias into weight / bias ----------
    scale = gamma / jnp.sqrt(var + eps)                              # (C_out,)
    wt = (w * scale[:, None, None, None]).transpose(2, 3, 1, 0)      # (KH,KW,Cin,Cout)
    wt = jnp.pad(wt, ((0, 0), (0, n_off * s - KW), (0, 0), (0, N_pad - C_out)))
    # Row order (kh, o, r, ci) with kw = o*s + r matches the patch layout below.
    w_packed = wt.reshape(K_tot, N_pad).astype(compute_dtype)
    bias = beta + (b - mean) * scale
    bias_p = jnp.pad(bias, (0, N_pad - C_out)).reshape(1, N_pad).astype(jnp.float32)

    # ---- Lane-dense merged-K patches: NCHW -> padded NHWC -> (B, M_pad, K) ---
    # TODO(synk): accept/return NHWC directly when the surrounding model is
    # channels-last to drop the two full-activation transposes.
    x_nhwc = jnp.transpose(x, (0, 2, 3, 1)).astype(compute_dtype)
    x_p = jnp.pad(x_nhwc, ((0, 0), (pad, pad),
                           (pad, max(0, Wp - W - pad)), (0, 0)))[:, :, :Wp, :]
    taps = []
    for kh in range(KH):
        rp = x_p[:, kh::s, :, :][:, :H_out]                  # (B, H_out, Wp, Cin)
        rp = rp.reshape(B, H_out, W_cp, s * C_in)            # group width as (w', r*Cin)
        for o in range(n_off):
            taps.append(rp[:, :, o:o + W_out, :])            # (B, H_out, W_out, s*Cin)
    patches = jnp.concatenate(taps, axis=-1).reshape(B, M, K_tot)
    patches = jnp.pad(patches, ((0, 0), (0, M_pad - M), (0, 0)))

    out_itemsize = jnp.dtype(compute_dtype).itemsize
    flops = 2 * B * M_pad * K_tot * N_pad
    bytes_accessed = (patches.size * patches.dtype.itemsize
                      + w_packed.size * w_packed.dtype.itemsize
                      + bias_p.size * 4
                      + B * M_pad * N_pad * out_itemsize)

    out = pl.pallas_call(
        _conv_bn_kernel,
        out_shape=jax.ShapeDtypeStruct((B, M_pad, N_pad), compute_dtype),
        grid=(B, n_mt),
        in_specs=[
            pl.BlockSpec((1, TM, K_tot), lambda bi, mi: (bi, mi, 0)),
            pl.BlockSpec((K_tot, N_pad), lambda bi, mi: (0, 0)),
            pl.BlockSpec((1, N_pad), lambda bi, mi: (0, 0)),
        ],
        out_specs=pl.BlockSpec((1, TM, N_pad), lambda bi, mi: (bi, mi, 0)),
        compiler_params=pltpu.CompilerParams(
            dimension_semantics=("parallel", "parallel")),
        cost_estimate=pl.CostEstimate(
            flops=flops, transcendentals=0, bytes_accessed=bytes_accessed),
    )(patches, w_packed, bias_p)

    y = out[:, :M, :C_out].reshape(B, H_out, W_out, C_out).astype(x.dtype)
    return jnp.transpose(y, (0, 3, 1, 2))


# ----------------------------------------------------------------------------
# Reference (pure JAX) for correctness check
# ----------------------------------------------------------------------------
def reference_forward(x, params, *, stride=2, pad=1, eps=1e-5):
    w = params["conv_weight"]
    y = lax.conv_general_dilated(
        x, w, window_strides=(stride, stride),
        padding=((pad, pad), (pad, pad)),
        dimension_numbers=("NCHW", "OIHW", "NCHW"),
    )
    y = y + params["conv_bias"][None, :, None, None]
    scale = params["bn_weight"] / jnp.sqrt(params["bn_running_var"] + eps)
    y = (y - params["bn_running_mean"][None, :, None, None]) * scale[None, :, None, None]
    y = y + params["bn_bias"][None, :, None, None]
    return y


# ----------------------------------------------------------------------------
# Deterministic synthetic parameter init (mirrors nn.Conv2d + nn.BatchNorm2d)
# ----------------------------------------------------------------------------
def init_params(key, in_chans, embed_dim, patch_size):
    k_w, k_b, k_m, k_v = jax.random.split(key, 4)
    fan_in = in_chans * patch_size * patch_size
    bound = 1.0 / jnp.sqrt(fan_in)
    return {
        "conv_weight": jax.random.uniform(
            k_w, (embed_dim, in_chans, patch_size, patch_size),
            minval=-bound, maxval=bound, dtype=jnp.float32),
        "conv_bias": jax.random.uniform(
            k_b, (embed_dim,), minval=-bound, maxval=bound, dtype=jnp.float32),
        "bn_weight": jnp.ones((embed_dim,), jnp.float32),
        "bn_bias": jnp.zeros((embed_dim,), jnp.float32),
        # synthetic "running" stats (eval-mode BatchNorm)
        "bn_running_mean": 0.1 * jax.random.normal(k_m, (embed_dim,), jnp.float32),
        "bn_running_var": 1.0 + 0.1 * jax.random.uniform(k_v, (embed_dim,), dtype=jnp.float32),
    }


if __name__ == "__main__":
    # SwiftFormer defaults: down_patch_size=3, down_stride=2, down_pad=1
    B, C_IN, H, W = 2, 4, 16, 16
    C_OUT = 8
    PATCH, STRIDE, PAD = 3, 2, 1
    EPS = 1e-5

    key = jax.random.PRNGKey(0)
    k_x, k_p = jax.random.split(key)
    x = jax.random.normal(k_x, (B, C_IN, H, W), dtype=jnp.float32)
    params = init_params(k_p, C_IN, C_OUT, PATCH)

    ref = reference_forward(x, params, stride=STRIDE, pad=PAD, eps=EPS)

    # f32 compute path: checks the gather / folding / indexing logic.
    out_f32 = swiftformer_embeddings_forward(
        x, params, stride=STRIDE, pad=PAD, eps=EPS, compute_dtype=jnp.float32)
    out_f32 = jax.block_until_ready(out_f32)
    assert out_f32.shape == (B, C_OUT, H // STRIDE, W // STRIDE), out_f32.shape
    assert jnp.allclose(out_f32, ref, atol=1e-2, rtol=1e-2), "f32 path mismatch vs reference"

    # bf16 MXU path (default): loose tolerance due to bf16 operand/output rounding.
    out_bf16 = swiftformer_embeddings_forward(x, params, stride=STRIDE, pad=PAD, eps=EPS)
    out_bf16 = jax.block_until_ready(out_bf16)
    assert out_bf16.shape == (B, C_OUT, H // STRIDE, W // STRIDE), out_bf16.shape
    assert jnp.allclose(out_bf16, ref, atol=5e-2, rtol=5e-2), "bf16 path mismatch vs reference"

    print("KERNEL_OK")
</pallas_src>

<mosaic_0001>
module attributes {stable_mosaic.version = 11 : i64} {
  func.func @_conv_bn_kernel(%arg0: i32, %arg1: i32, %arg2: memref<1x64x48xf32, #tpu.memory_space<vmem>>, %arg3: memref<48x128xf32, #tpu.memory_space<vmem>>, %arg4: memref<1x128xf32, #tpu.memory_space<vmem>>, %arg5: memref<1x64x128xf32, #tpu.memory_space<vmem>>) attributes {dimension_semantics = [#tpu.dimension_semantics<parallel>, #tpu.dimension_semantics<parallel>], iteration_bounds = array<i64: 2, 1>, scalar_prefetch = 0 : i64, scratch_operands = 0 : i64, tpu.core_type = #tpu.core_type<tc>, window_params = [{transform_indices = @transform_0, window_bounds = array<i64: 1, 64, 48>}, {pipeline_mode = #tpu.pipeline_mode<synchronous>, transform_indices = @transform_1, window_bounds = array<i64: 48, 128>}, {pipeline_mode = #tpu.pipeline_mode<synchronous>, transform_indices = @transform_2, window_bounds = array<i64: 1, 128>}, {transform_indices = @transform_3, window_bounds = array<i64: 1, 64, 128>}]} {
    %c0 = arith.constant 0 : index
    %c0_0 = arith.constant 0 : index
    %c0_1 = arith.constant 0 : index
    %0 = vector.load %arg2[%c0, %c0_0, %c0_1] : memref<1x64x48xf32, #tpu.memory_space<vmem>>, vector<1x64x48xf32>
    %1 = vector.shape_cast %0 : vector<1x64x48xf32> to vector<64x48xf32>
    %c0_2 = arith.constant 0 : index
    %c0_3 = arith.constant 0 : index
    %2 = vector.load %arg3[%c0_2, %c0_3] : memref<48x128xf32, #tpu.memory_space<vmem>>, vector<48x128xf32>
    %cst = arith.constant dense<0.000000e+00> : vector<64x128xf32>
    %3 = tpu.matmul %1, %2, %cst {dimension_numbers = #tpu.dot_dimension_numbers<[1], [0], [0], [1], [0, 0, 1, 1], [], []>} : vector<64x48xf32>, vector<48x128xf32>, vector<64x128xf32> -> vector<64x128xf32>
    %c0_4 = arith.constant 0 : index
    %c0_5 = arith.constant 0 : index
    %4 = vector.load %arg4[%c0_4, %c0_5] : memref<1x128xf32, #tpu.memory_space<vmem>>, vector<1x128xf32>
    %5 = vector.broadcast %4 : vector<1x128xf32> to vector<64x128xf32>
    %6 = arith.addf %3, %5 : vector<64x128xf32>
    %c0_6 = arith.constant 0 : index
    %c0_7 = arith.constant 0 : index
    %c0_8 = arith.constant 0 : index
    %7 = vector.load %arg5[%c0_6, %c0_7, %c0_8] : memref<1x64x128xf32, #tpu.memory_space<vmem>>, vector<1x64x128xf32>
    %8 = vector.shape_cast %7 : vector<1x64x128xf32> to vector<64x128xf32>
    %9 = vector.shape_cast %6 : vector<64x128xf32> to vector<1x64x128xf32>
    tpu.vector_store %arg5[%c0_6, %c0_7, %c0_8], %9 {strides = array<i32>} : memref<1x64x128xf32, #tpu.memory_space<vmem>>, vector<1x64x128xf32>,
    return
  }
  func.func @transform_0(%arg0: i32, %arg1: i32) -> (i32, i32, i32) {
    %c0_i32 = arith.constant 0 : i32
    %c0_i32_0 = arith.constant 0 : i32
    return %arg0, %arg1, %c0_i32 : i32, i32, i32
  }
  func.func @transform_1(%arg0: i32, %arg1: i32) -> (i32, i32) {
    %c0_i32 = arith.constant 0 : i32
    %c0_i32_0 = arith.constant 0 : i32
    %c0_i32_1 = arith.constant 0 : i32
    return %c0_i32, %c0_i32_0 : i32, i32
  }
  func.func @transform_2(%arg0: i32, %arg1: i32) -> (i32, i32) {
    %c0_i32 = arith.constant 0 : i32
    %c0_i32_0 = arith.constant 0 : i32
    %c0_i32_1 = arith.constant 0 : i32
    return %c0_i32, %c0_i32_0 : i32, i32
  }
  func.func @transform_3(%arg0: i32, %arg1: i32) -> (i32, i32, i32) {
    %c0_i32 = arith.constant 0 : i32
    %c0_i32_0 = arith.constant 0 : i32
    return %arg0, %arg1, %c0_i32 : i32, i32, i32
  }
}

</mosaic_0001>

<bundles_post_ra>
// kernel: swiftformer_embeddings_forward.1
= control target key start
LH: loop header
LB: loop body
LE: loop exit
PB: predicated region body
PF: predicated region fallthrough
CT: control target
= control target key end

     0   :  { %s602_s12 = smov 0   ;;  %s604_s13 = smov 0   ;;  %s671_s0 = inlined_call_operand.vmem [shape: f32[2,64,48], index: 0, kind: input, shape index: {}]   ;;  %s672_s1 = inlined_call_operand.vmem [shape: f32[48,128], index: 1, kind: input, shape index: {}]   ;;  %s673_s2 = inlined_call_operand.vmem [shape: f32[1,128], index: 2, kind: input, shape index: {}]   ;;  %s674_s3 = inlined_call_operand.vmem [shape: f32[2,64,128], index: 3, kind: output, shape index: {}]  }
   0x1   :  { %s606_s14 = smov 0  }
   0x2 LB: > { %s25_s15 = sadd.s32 1, %s576_s13  ;;  %p460_p0 = scmp.ge.s32.totalorder %s580_s14, 1  ;;  %s580_s14 = sphi %s606_s14, %s13_s14   ;;  %s576_s13 = sphi %s604_s13, %s676_s13   ;;  %s572_s12 = sphi %s602_s12, %s675_s12  }
   0x3   : > { %p27_p1 = scmp.ge.s32.totalorder %s25_s15, 2  ;;  %p158_p2 = scmp.lt.s32.totalorder %s580_s14, 3 }
   0x5   : > { %s678_s15 = smov (%p27_p1, %s25_s15), 0  ;;  %p159_p3 = pnand %p460_p0, %p158_p2 }
   0x6   : > { %v218_v0 = vld [vmem:[%s672_s1] sm:$0xff] (!%p159_p3)  ;;  %v219_v1 = vld [vmem:[%s672_s1 + $0x8] sm:$0xff] (!%p159_p3)  ;;  %v220_v2 = vld [vmem:[%s672_s1 + $0x10] sm:$0xff] (!%p159_p3)  ;;  %p191_p4 = scmp.lt.s32.totalorder (!%p159_p3), %s572_s12, 1  ;;  %vm231_vm0 = vcmask (!%p159_p3), 392192  }
   0x7   : > { %162 = sbr.rel (%p159_p3) target bundleno = 242 (0xf2), region = 32  ;;  %v516_v3 = vpack.c.bf16 (!%p159_p3), %v219_v1, %v218_v0  ;;  %v221_v4 = vld [vmem:[%s672_s1 + $0x18] sm:$0xff] (!%p159_p3)  ;;  %v222_v6 = vld [vmem:[%s672_s1 + $0x20] sm:$0xff] (!%p159_p3)  ;;  %v223_v7 = vld [vmem:[%s672_s1 + $0x28] sm:$0xff] (!%p159_p3) }
   0x8   : > { %v520_v5 = vpack.c.bf16 (!%p159_p3), %v221_v4, %v220_v2  ;;  %v524_v8 = vpack.c.bf16 (!%p159_p3), %v223_v7, %v222_v6  ;;  %v465_v17 = vld [vmem:[%s673_s2] ss:$0 sm:$0xff] (!%p159_p3) }
   0x9   : > { %517 = vmatprep.subr.bf16.mxu0 (!%p159_p3), %v516_v3  ;;  %528 = vmatprep.subr.bf16.mxu1 (!%p159_p3), %v516_v3 }
   0xa   : > { %519 = vmatpush3.bf16.msra.mxu0 (!%p159_p3), %v516_v3  ;;  %531 = vmatpush3.bf16.msra.mxu1 (!%p159_p3), %v516_v3 }
   0xb   : > { %521 = vmatprep.subr.bf16.mxu0 (!%p159_p3), %v520_v5  ;;  %529 = vmatprep.subr.bf16.mxu1 (!%p159_p3), %v520_v5 }
   0xe   : > { %s680_s12 = smov (!%p191_p4, %s572_s12), 1  ;;  %523 = vmatpush3.bf16.msra.mxu0 %v520_v5  ;;  %532 = vmatpush3.bf16.msra.mxu1 %v520_v5 }
   0xf   : > { %s476_s28 = sshll.u32 %s680_s12, 6  ;;  %525 = vmatprep.subr.bf16.mxu0 %v524_v8  ;;  %530 = vmatprep.subr.bf16.mxu1 %v524_v8 }
  0x10   : > { %s198_s4 = scalar_lea.vmem %s671_s0, %s476_s28  ;;  %s208_s9 = scalar_lea.vmem %s674_s3, %s476_s28 }
  0x11   : > { %v210_v9 = vld [vmem:[%s198_s4] sm:$0xff]  ;;  %v211_v11 = vld [vmem:[%s198_s4 + $0x8] sm:$0xff]  ;;  %v212_v13 = vld [vmem:[%s198_s4 + $0x10] sm:$0xff] }
  0x12   : > { %v214_v10 = vld [vmem:[%s198_s4 + $0x20] sm:$0xff]  ;;  %504 = vmatprep.mubr.msk.f32.mxu0 %vm231_vm0, %v210_v9  ;;  %527 = vmatpush3.bf16.msra.mxu0 %v524_v8  ;;  %v215_v12 = vld [vmem:[%s198_s4 + $0x28] sm:$0xff]  ;;  %v216_v14 = vld [vmem:[%s198_s4 + $0x30] sm:$0xff] }
  0x13   : > { %510 = vmatprep.mubr.msk.f32.mxu1 %vm231_vm0, %v214_v10  ;;  %533 = vmatpush3.bf16.msra.mxu1 %v524_v8  ;;  %v213_v15 = vld [vmem:[%s198_s4 + $0x18] sm:$0xff] }
  0x14   : > { %v217_v16 = vld [vmem:[%s198_s4 + $0x38] sm:$0xff] }
  0x15   : > { %505 = vmatmul.mubr.msk.f32.vlgmr.msra.gmra.mrb[0].mxu0 %vm231_vm0, %v211_v11 }
  0x16   : > { %511 = vmatmul.mubr.msk.f32.vlgmr.msra.gmra.mrb[0].mxu1 %vm231_vm0, %v215_v12  ;;  %507 = vmatprep.mubr.msk.f32.mxu0 %vm231_vm0, %v212_v13 }
  0x17   : > { %513 = vmatprep.mubr.msk.f32.mxu1 %vm231_vm0, %v216_v14 }
  0x19   : > { %508 = vmatmul.mubr.msk.f32.gmra.mrb[2].mxu0 %vm231_vm0, %v213_v15 }
  0x1a   : > { %514 = vmatmul.mubr.msk.f32.gmra.mrb[2].mxu1 %vm231_vm0, %v217_v16 }
  0xe8   : > { %v506_v18 = vpop.f32.mrb[0].mxu0 }
  0xe9   : > { %v512_v19 = vpop.f32.mrb[0].mxu1  ;;  %v328_v20 = vadd.f32 %v506_v18, %v465_v17  ;;  %v322_v22 = vpop.f32.mrb[1].mxu0 }
  0xea   : > { %v348_v21 = vadd.f32 %v512_v19, %v465_v17  ;;  %v342_v23 = vpop.f32.mrb[1].mxu1  ;;  %v323_v24 = vadd.f32 %v465_v17, %v322_v22 }
  0xeb   : > { %v343_v25 = vadd.f32 %v465_v17, %v342_v23  ;;  %362 = vst [vmem:[%s208_s9 + $0x8] sm:$0xff] %v328_v20 }
  0xec   : > { %366 = vst [vmem:[%s208_s9 + $0x28] sm:$0xff] %v348_v21  ;;  %361 = vst [vmem:[%s208_s9] sm:$0xff] %v323_v24  ;;  %v509_v26 = vpop.f32.mrb[2].mxu0 }
  0xed   : > { %365 = vst [vmem:[%s208_s9 + $0x20] sm:$0xff] %v343_v25  ;;  %v515_v27 = vpop.f32.mrb[2].mxu1  ;;  %v338_v28 = vadd.f32 %v509_v26, %v465_v17  ;;  %v332_v30 = vpop.f32.mrb[3].mxu0 }
  0xee   : > { %v358_v29 = vadd.f32 %v515_v27, %v465_v17  ;;  %v352_v31 = vpop.f32.mrb[3].mxu1  ;;  %v333_v32 = vadd.f32 %v465_v17, %v332_v30 }
  0xef   : > { %v353_v33 = vadd.f32 %v465_v17, %v352_v31  ;;  %364 = vst [vmem:[%s208_s9 + $0x18] sm:$0xff] %v338_v28 }
  0xf0   : > { %368 = vst [vmem:[%s208_s9 + $0x38] sm:$0xff] %v358_v29  ;;  %363 = vst [vmem:[%s208_s9 + $0x10] sm:$0xff] %v333_v32 }
  0xf1   : > { %367 = vst [vmem:[%s208_s9 + $0x30] sm:$0xff] %v353_v33 }
  0xf2 PF: > { %s13_s14 = sadd.s32 1, %s580_s14   ;;  %s675_s12 = smov %s576_s13 }
  0xf3   : > { %p10_p5 = scmp.ge.s32.totalorder %s13_s14, 4   ;;  %s676_s13 = smov %s678_s15 }
  0xf5   :  { %12 = sbr.rel (!%p10_p5) target bundleno = 2 (0x2), region = 62 }

</bundles_post_ra>
